<compile_context>
chip_gen: v6e
topology: v6e:2x2x1
jax: 0.10.0
libtpu: 0.0.40
codegen_flags: <defaults>
</compile_context>

<pallas_src>
import functools
import math

import jax
import jax.numpy as jnp
from jax.experimental import pallas as pl
from jax.experimental.pallas import tpu as pltpu


def gat_kernel(h_ref, w_ref, asrc_ref, adst_ref, adj_ref, bias_ref, out_ref,
               *, n_head, f_out, hf, pad_cols, compute_dtype):
    # h_ref:    (TB, n, f_in)
    # w_ref:    (f_in, hf_pad)         head-fused weights (lane-dense RHS)
    # asrc_ref: (hf_pad, n_head)       block-structured a_src
    # adst_ref: (hf_pad, n_head)       block-structured a_dst
    # adj_ref:  (TB, n, n)             0/1 adjacency
    # bias_ref: (1, 1, hf_pad)         bias tiled per head
    # out_ref:  (TB, n, hf_pad)        lane-dense output
    tb, n, f_in = h_ref.shape
    hf_pad = hf + pad_cols

    # ---- One fused matmul for all heads and all TB batch elements --------
    # LHS has TB*n sublane rows (sized in the wrapper to fill the MXU).
    h = h_ref[...].astype(compute_dtype).reshape(tb * n, f_in)
    w = w_ref[...].astype(compute_dtype)
    h_prime = jnp.dot(h, w, preferred_element_type=jnp.float32)    # (TB*n, hf_pad) f32
    t_c = jnp.tanh(h_prime).astype(compute_dtype)                  # tanh in f32, cast for MXU

    # ---- Two MXU dots replace the 2*H per-head matvecs -------------------
    src_all = jnp.dot(t_c, asrc_ref[...].astype(compute_dtype),
                      preferred_element_type=jnp.float32)          # (TB*n, H)
    dst_all = jnp.dot(t_c, adst_ref[...].astype(compute_dtype),
                      preferred_element_type=jnp.float32)          # (TB*n, H)

    src3 = src_all.reshape(tb, n, n_head)                          # (TB, n, H)
    dst_t = jnp.swapaxes(dst_all.reshape(tb, n, n_head), -1, -2)   # (TB, H, n)
    hp3 = h_prime.reshape(tb, n, hf_pad)                           # (TB, n, hf_pad)

    # torch: mask = (1 - adj) != 0  <=>  adj != 1 (no temp, no dtype convert).
    mask = adj_ref[...] != 1.0                                     # (TB, n, n) bool
    neg_big = jnp.float32(-1e30)   # finite fill: no NaN on fully-masked rows

    bias = bias_ref[...]                                           # (1, 1, hf_pad)

    for hd in range(n_head):                          # static, unrolled (H is small)
        lo = hd * f_out
        # attn[b, i, j] = src[b, i] + dst[b, j]
        logits = src3[:, :, hd:hd + 1] + dst_t[:, hd:hd + 1, :]    # (TB, n, n)
        logits = jnp.where(logits >= 0, logits, 0.2 * logits)      # LeakyReLU(0.2)
        logits = jnp.where(mask, neg_big, logits)
        # softmax over neighbors; 1/sum folded into the (TB, n, f_out) output.
        m = jnp.max(logits, axis=-1, keepdims=True)
        e = jnp.exp(logits - m)                                    # (TB, n, n) f32
        inv_s = pl.reciprocal(jnp.sum(e, axis=-1, keepdims=True),
                              approx=True)                         # EUP slot
        num = jnp.einsum('bqk,bkf->bqf',
                         e.astype(compute_dtype),
                         hp3[:, :, lo:lo + f_out].astype(compute_dtype),
                         preferred_element_type=jnp.float32)       # (TB, n, f_out)
        # Stream this head's result into its lane slice: only one head's f32
        # output is live at a time; the HBM DMA of the full block is lane-dense.
        out_ref[:, :, lo:lo + f_out] = (
            num * inv_s + bias[:, :, lo:lo + f_out]).astype(out_ref.dtype)

    if pad_cols > 0:
        out_ref[:, :, hf:] = jnp.zeros((tb, n, pad_cols), out_ref.dtype)


def _choose_tb(bs, n):
    """Batch elements per grid step: fill >=256 MXU rows (v6e/v7x; >=128 is
    already enough on v5e) while keeping >= 2 parallel grid steps so v7x's
    second TensorCore gets work."""
    tb = max(1, 256 // max(n, 1))
    tb = min(tb, bs)
    if bs >= 2:
        tb = min(tb, -(-bs // 2))   # cap at ceil(bs/2) -> grid >= 2
    return tb


def batch_multi_head_gat(h, adj, w, a_src, a_dst, bias, *,
                         compute_dtype=jnp.bfloat16):
    """h: (bs, n, f_in); adj: (bs, n, n); w: (n_head, f_in, f_out);
    a_src/a_dst: (n_head, f_out, 1); bias: (f_out,).
    Returns (bs, n_head, n, f_out) matching the PyTorch module."""
    bs, n, f_in = h.shape
    n_head, _, f_out = w.shape
    hf = n_head * f_out
    hf_pad = pl.cdiv(hf, 128) * 128          # lane-dense store / MXU RHS
    pad_cols = hf_pad - hf

    # Head-fused weight: W_all[:, hd*f_out:(hd+1)*f_out] = w[hd]   (zero-padded)
    w_all = jnp.transpose(w, (1, 0, 2)).reshape(f_in, hf)
    if pad_cols:
        w_all = jnp.pad(w_all, ((0, 0), (0, pad_cols)))

    # Block-structured logit projections (both (hf_pad, n_head): src and dst
    # become the same t @ A matmul shape inside the kernel).
    a_src_mat = jnp.zeros((hf_pad, n_head), jnp.float32)
    a_dst_mat = jnp.zeros((hf_pad, n_head), jnp.float32)
    for hd in range(n_head):
        a_src_mat = a_src_mat.at[hd * f_out:(hd + 1) * f_out, hd].set(
            a_src[hd, :, 0].astype(jnp.float32))
        a_dst_mat = a_dst_mat.at[hd * f_out:(hd + 1) * f_out, hd].set(
            a_dst[hd, :, 0].astype(jnp.float32))

    # Bias tiled per head so it can be added to the lane-dense output.
    bias_all = jnp.tile(bias.astype(jnp.float32), n_head).reshape(1, 1, hf)
    if pad_cols:
        bias_all = jnp.pad(bias_all, ((0, 0), (0, 0), (0, pad_cols)))

    # ---- batch TB elements per grid step, pad bs to a multiple of TB ------
    tb = _choose_tb(bs, n)
    n_steps = -(-bs // tb)
    bs_pad = n_steps * tb
    if bs_pad != bs:
        h_in = jnp.pad(h, ((0, bs_pad - bs), (0, 0), (0, 0)))
        adj_in = jnp.pad(adj, ((0, bs_pad - bs), (0, 0), (0, 0)))
    else:
        h_in, adj_in = h, adj

    # adj stream dtype: f32 at small n (bf16 saves nothing after (8,128) tile
    # padding and costs converts); bf16 for large-n 0/1 masks (halves HBM DMA).
    adj_dtype = jnp.float32 if n < 512 else jnp.bfloat16

    kernel = functools.partial(gat_kernel, n_head=n_head, f_out=f_out, hf=hf,
                               pad_cols=pad_cols, compute_dtype=compute_dtype)

    out_flat = pl.pallas_call(
        kernel,
        out_shape=jax.ShapeDtypeStruct((bs_pad, n, hf_pad), jnp.float32),
        grid_spec=pltpu.PrefetchScalarGridSpec(
            num_scalar_prefetch=0,
            grid=(n_steps,),
            in_specs=[
                pl.BlockSpec((tb, n, f_in), lambda b: (b, 0, 0)),     # h
                pl.BlockSpec((f_in, hf_pad), lambda b: (0, 0)),       # w_all
                pl.BlockSpec((hf_pad, n_head), lambda b: (0, 0)),     # a_src_mat
                pl.BlockSpec((hf_pad, n_head), lambda b: (0, 0)),     # a_dst_mat
                pl.BlockSpec((tb, n, n), lambda b: (b, 0, 0)),        # adj
                pl.BlockSpec((1, 1, hf_pad), lambda b: (0, 0, 0)),    # bias
            ],
            out_specs=pl.BlockSpec((tb, n, hf_pad), lambda b: (b, 0, 0)),
        ),
        compiler_params=pltpu.CompilerParams(
            dimension_semantics=("parallel",)),   # >=2 steps -> both v7x TCs
    )(h_in.astype(compute_dtype),
      w_all.astype(compute_dtype),
      a_src_mat.astype(compute_dtype),
      a_dst_mat.astype(compute_dtype),
      adj_in.astype(adj_dtype),
      bias_all)

    # Lane-dense kernel output -> module layout (free layout plumbing).
    out = out_flat[:bs, :, :hf]
    return out.reshape(bs, n, n_head, f_out).transpose(0, 2, 1, 3)


def reference_gat(h, adj, w, a_src, a_dst, bias):
    # Pure-JAX replica of the PyTorch forward (eval mode) for verification.
    h_prime = jnp.einsum('bnf,hfo->bhno', h, w)
    t = jnp.tanh(h_prime)
    attn_src = jnp.einsum('bhno,hoz->bhnz', t, a_src)   # (bs, H, n, 1)
    attn_dst = jnp.einsum('bhno,hoz->bhnz', t, a_dst)   # (bs, H, n, 1)
    attn = attn_src + jnp.swapaxes(attn_dst, -1, -2)    # (bs, H, n, n)
    attn = jnp.where(attn >= 0, attn, 0.2 * attn)
    mask = (1.0 - adj[:, None, :, :]) != 0.0
    attn = jnp.where(mask, -jnp.inf, attn)
    attn = jax.nn.softmax(attn, axis=-1)
    out = jnp.einsum('bhnm,bhmo->bhno', attn, h_prime)
    return out + bias


if __name__ == "__main__":
    def check(bs, n, f_in, f_out, n_head, seed):
        key = jax.random.PRNGKey(seed)
        k_h, k_adj, k_w, k_as, k_ad = jax.random.split(key, 5)

        h = jax.random.normal(k_h, (bs, n, f_in), dtype=jnp.float32)
        adj = (jax.random.uniform(k_adj, (bs, n, n)) > 0.5).astype(jnp.float32)
        # self-loops so no row is fully masked
        adj = jnp.maximum(adj, jnp.eye(n, dtype=jnp.float32)[None, :, :])

        w_bound = math.sqrt(6.0 / (f_in * f_out + n_head * f_out))
        a_bound = math.sqrt(6.0 / (f_out + n_head))
        w = jax.random.uniform(k_w, (n_head, f_in, f_out),
                               minval=-w_bound, maxval=w_bound,
                               dtype=jnp.float32)
        a_src = jax.random.uniform(k_as, (n_head, f_out, 1),
                                   minval=-a_bound, maxval=a_bound,
                                   dtype=jnp.float32)
        a_dst = jax.random.uniform(k_ad, (n_head, f_out, 1),
                                   minval=-a_bound, maxval=a_bound,
                                   dtype=jnp.float32)
        bias = jnp.zeros((f_out,), dtype=jnp.float32)

        ref = reference_gat(h, adj, w, a_src, a_dst, bias)

        # f32 MXU path — tight check (approx reciprocal bounds the tolerance).
        out_f32 = jax.block_until_ready(
            batch_multi_head_gat(h, adj, w, a_src, a_dst, bias,
                                 compute_dtype=jnp.float32))
        if not jnp.allclose(out_f32, ref, atol=5e-3, rtol=5e-3):
            raise AssertionError(f"Pallas kernel (f32) mismatch at bs={bs}")

        # bf16 MXU default/perf path — loosened tolerance for bf16 rounding.
        out_bf16 = jax.block_until_ready(
            batch_multi_head_gat(h, adj, w, a_src, a_dst, bias))
        if not jnp.allclose(out_bf16, ref, atol=1e-1, rtol=1e-1):
            raise AssertionError(f"Pallas kernel (bf16) mismatch at bs={bs}")

    # Original small shape: TB=1 -> grid of 2 parallel steps (v7x dual-TC path).
    check(bs=2, n=8, f_in=16, f_out=32, n_head=4, seed=0)
    # Batched path: TB=3 batch elements per grid step + one zero-padded batch row.
    check(bs=5, n=8, f_in=16, f_out=32, n_head=4, seed=1)

    print("KERNEL_OK")
</pallas_src>

<mosaic_0001>
module attributes {stable_mosaic.version = 11 : i64} {
  func.func @gat_kernel(%arg0: i32, %arg1: memref<1x8x16xf32, #tpu.memory_space<vmem>>, %arg2: memref<16x128xf32, #tpu.memory_space<vmem>>, %arg3: memref<128x4xf32, #tpu.memory_space<vmem>>, %arg4: memref<128x4xf32, #tpu.memory_space<vmem>>, %arg5: memref<1x8x8xf32, #tpu.memory_space<vmem>>, %arg6: memref<1x1x128xf32, #tpu.memory_space<vmem>>, %arg7: memref<1x8x128xf32, #tpu.memory_space<vmem>>) attributes {dimension_semantics = [#tpu.dimension_semantics<parallel>], iteration_bounds = array<i64: 2>, scalar_prefetch = 0 : i64, scratch_operands = 0 : i64, tpu.core_type = #tpu.core_type<tc>, window_params = [{transform_indices = @transform_0, window_bounds = array<i64: 1, 8, 16>}, {pipeline_mode = #tpu.pipeline_mode<synchronous>, transform_indices = @transform_1, window_bounds = array<i64: 16, 128>}, {pipeline_mode = #tpu.pipeline_mode<synchronous>, transform_indices = @transform_2, window_bounds = array<i64: 128, 4>}, {pipeline_mode = #tpu.pipeline_mode<synchronous>, transform_indices = @transform_3, window_bounds = array<i64: 128, 4>}, {transform_indices = @transform_4, window_bounds = array<i64: 1, 8, 8>}, {pipeline_mode = #tpu.pipeline_mode<synchronous>, transform_indices = @transform_5, window_bounds = array<i64: 1, 1, 128>}, {transform_indices = @transform_6, window_bounds = array<i64: 1, 8, 128>}]} {
    %c0 = arith.constant 0 : index
    %c0_0 = arith.constant 0 : index
    %c0_1 = arith.constant 0 : index
    %0 = vector.load %arg1[%c0, %c0_0, %c0_1] : memref<1x8x16xf32, #tpu.memory_space<vmem>>, vector<1x8x16xf32>
    %1 = vector.shape_cast %0 : vector<1x8x16xf32> to vector<8x16xf32>
    %c0_2 = arith.constant 0 : index
    %c0_3 = arith.constant 0 : index
    %2 = vector.load %arg2[%c0_2, %c0_3] : memref<16x128xf32, #tpu.memory_space<vmem>>, vector<16x128xf32>
    %cst = arith.constant dense<0.000000e+00> : vector<8x128xf32>
    %3 = tpu.matmul %1, %2, %cst {dimension_numbers = #tpu.dot_dimension_numbers<[1], [0], [0], [1], [0, 0, 1, 1], [], []>} : vector<8x16xf32>, vector<16x128xf32>, vector<8x128xf32> -> vector<8x128xf32>
    %4 = math.tanh %3 : vector<8x128xf32>
    %c0_4 = arith.constant 0 : index
    %c0_5 = arith.constant 0 : index
    %5 = vector.load %arg3[%c0_4, %c0_5] : memref<128x4xf32, #tpu.memory_space<vmem>>, vector<128x4xf32>
    %cst_6 = arith.constant dense<0.000000e+00> : vector<8x4xf32>
    %6 = tpu.matmul %4, %5, %cst_6 {dimension_numbers = #tpu.dot_dimension_numbers<[1], [0], [0], [1], [0, 0, 1, 1], [], []>} : vector<8x128xf32>, vector<128x4xf32>, vector<8x4xf32> -> vector<8x4xf32>
    %c0_7 = arith.constant 0 : index
    %c0_8 = arith.constant 0 : index
    %7 = vector.load %arg4[%c0_7, %c0_8] : memref<128x4xf32, #tpu.memory_space<vmem>>, vector<128x4xf32>
    %cst_9 = arith.constant dense<0.000000e+00> : vector<8x4xf32>
    %8 = tpu.matmul %4, %7, %cst_9 {dimension_numbers = #tpu.dot_dimension_numbers<[1], [0], [0], [1], [0, 0, 1, 1], [], []>} : vector<8x128xf32>, vector<128x4xf32>, vector<8x4xf32> -> vector<8x4xf32>
    %9 = vector.shape_cast %6 : vector<8x4xf32> to vector<1x8x4xf32>
    %10 = vector.shape_cast %8 : vector<8x4xf32> to vector<1x8x4xf32>
    %11 = tpu.transpose %10, [0, 2, 1] : vector<1x8x4xf32> -> vector<1x4x8xf32>
    %12 = vector.shape_cast %3 : vector<8x128xf32> to vector<1x8x128xf32>
    %c0_10 = arith.constant 0 : index
    %c0_11 = arith.constant 0 : index
    %c0_12 = arith.constant 0 : index
    %13 = vector.load %arg5[%c0_10, %c0_11, %c0_12] : memref<1x8x8xf32, #tpu.memory_space<vmem>>, vector<1x8x8xf32>
    %cst_13 = arith.constant 1.000000e+00 : f32
    %14 = vector.broadcast %cst_13 : f32 to vector<1x8x8xf32>
    %15 = arith.cmpf one, %13, %14 : vector<1x8x8xf32>
    %c0_14 = arith.constant 0 : index
    %c0_15 = arith.constant 0 : index
    %c0_16 = arith.constant 0 : index
    %16 = vector.load %arg6[%c0_14, %c0_15, %c0_16] : memref<1x1x128xf32, #tpu.memory_space<vmem>>, vector<1x1x128xf32>
    %17 = vector.extract_strided_slice %9 {offsets = [0, 0, 0], sizes = [1, 8, 1], strides = [1, 1, 1]} : vector<1x8x4xf32> to vector<1x8x1xf32>
    %18 = vector.extract_strided_slice %11 {offsets = [0, 0, 0], sizes = [1, 1, 8], strides = [1, 1, 1]} : vector<1x4x8xf32> to vector<1x1x8xf32>
    %19 = vector.broadcast %17 : vector<1x8x1xf32> to vector<1x8x8xf32>
    %20 = vector.broadcast %18 : vector<1x1x8xf32> to vector<1x8x8xf32>
    %21 = arith.addf %19, %20 : vector<1x8x8xf32>
    %cst_17 = arith.constant 0.000000e+00 : f32
    %22 = vector.broadcast %cst_17 : f32 to vector<1x8x8xf32>
    %23 = arith.cmpf oge, %21, %22 : vector<1x8x8xf32>
    %cst_18 = arith.constant 2.000000e-01 : f32
    %24 = vector.broadcast %cst_18 : f32 to vector<1x8x8xf32>
    %25 = arith.mulf %24, %21 : vector<1x8x8xf32>
    %26 = arith.select %23, %21, %25 : vector<1x8x8xi1>, vector<1x8x8xf32>
    %cst_19 = arith.constant -1.000000e+30 : f32
    %27 = vector.broadcast %cst_19 : f32 to vector<1x8x8xf32>
    %28 = arith.select %15, %27, %26 : vector<1x8x8xi1>, vector<1x8x8xf32>
    %cst_20 = arith.constant dense<0xFF800000> : vector<1x8xf32>
    %29 = vector.multi_reduction <maximumf>, %28, %cst_20 [2] : vector<1x8x8xf32> to vector<1x8xf32>
    %30 = vector.shape_cast %29 : vector<1x8xf32> to vector<1x8x1xf32>
    %31 = vector.broadcast %30 : vector<1x8x1xf32> to vector<1x8x8xf32>
    %32 = arith.subf %28, %31 : vector<1x8x8xf32>
    %33 = math.exp %32 : vector<1x8x8xf32>
    %cst_21 = arith.constant dense<0.000000e+00> : vector<1x8xf32>
    %34 = vector.multi_reduction <add>, %33, %cst_21 [2] : vector<1x8x8xf32> to vector<1x8xf32>
    %35 = vector.shape_cast %34 : vector<1x8xf32> to vector<1x8x1xf32>
    %36 = tpu.reciprocal %35 {approx = true} : vector<1x8x1xf32> -> vector<1x8x1xf32>
    %37 = vector.extract_strided_slice %12 {offsets = [0, 0, 0], sizes = [1, 8, 32], strides = [1, 1, 1]} : vector<1x8x128xf32> to vector<1x8x32xf32>
    "tpu.trace_start"() <{level = 10 : i32, message = "bqk,bkf->bqf"}> : () -> ()
    %cst_22 = arith.constant dense<0.000000e+00> : vector<1x8x32xf32>
    %38 = tpu.matmul %33, %37, %cst_22 {dimension_numbers = #tpu.dot_dimension_numbers<[2], [1], [1], [2], [0, 0, 0, 1, 1, 2], [0], [0]>} : vector<1x8x8xf32>, vector<1x8x32xf32>, vector<1x8x32xf32> -> vector<1x8x32xf32>
    "tpu.trace_stop"() : () -> ()
    %39 = vector.broadcast %36 : vector<1x8x1xf32> to vector<1x8x32xf32>
    %40 = arith.mulf %38, %39 : vector<1x8x32xf32>
    %41 = vector.extract_strided_slice %16 {offsets = [0, 0, 0], sizes = [1, 1, 32], strides = [1, 1, 1]} : vector<1x1x128xf32> to vector<1x1x32xf32>
    %42 = vector.broadcast %41 : vector<1x1x32xf32> to vector<1x8x32xf32>
    %43 = arith.addf %40, %42 : vector<1x8x32xf32>
    %c0_23 = arith.constant 0 : index
    %c0_24 = arith.constant 0 : index
    %c0_25 = arith.constant 0 : index
    %44 = vector.load %arg7[%c0_23, %c0_24, %c0_25] : memref<1x8x128xf32, #tpu.memory_space<vmem>>, vector<1x8x32xf32>
    tpu.vector_store %arg7[%c0_23, %c0_24, %c0_25], %43 {strides = array<i32>} : memref<1x8x128xf32, #tpu.memory_space<vmem>>, vector<1x8x32xf32>,
    %45 = vector.extract_strided_slice %9 {offsets = [0, 0, 1], sizes = [1, 8, 1], strides = [1, 1, 1]} : vector<1x8x4xf32> to vector<1x8x1xf32>
    %46 = vector.extract_strided_slice %11 {offsets = [0, 1, 0], sizes = [1, 1, 8], strides = [1, 1, 1]} : vector<1x4x8xf32> to vector<1x1x8xf32>
    %47 = vector.broadcast %45 : vector<1x8x1xf32> to vector<1x8x8xf32>
    %48 = vector.broadcast %46 : vector<1x1x8xf32> to vector<1x8x8xf32>
    %49 = arith.addf %47, %48 : vector<1x8x8xf32>
    %cst_26 = arith.constant 0.000000e+00 : f32
    %50 = vector.broadcast %cst_26 : f32 to vector<1x8x8xf32>
    %51 = arith.cmpf oge, %49, %50 : vector<1x8x8xf32>
    %cst_27 = arith.constant 2.000000e-01 : f32
    %52 = vector.broadcast %cst_27 : f32 to vector<1x8x8xf32>
    %53 = arith.mulf %52, %49 : vector<1x8x8xf32>
    %54 = arith.select %51, %49, %53 : vector<1x8x8xi1>, vector<1x8x8xf32>
    %cst_28 = arith.constant -1.000000e+30 : f32
    %55 = vector.broadcast %cst_28 : f32 to vector<1x8x8xf32>
    %56 = arith.select %15, %55, %54 : vector<1x8x8xi1>, vector<1x8x8xf32>
    %cst_29 = arith.constant dense<0xFF800000> : vector<1x8xf32>
    %57 = vector.multi_reduction <maximumf>, %56, %cst_29 [2] : vector<1x8x8xf32> to vector<1x8xf32>
    %58 = vector.shape_cast %57 : vector<1x8xf32> to vector<1x8x1xf32>
    %59 = vector.broadcast %58 : vector<1x8x1xf32> to vector<1x8x8xf32>
    %60 = arith.subf %56, %59 : vector<1x8x8xf32>
    %61 = math.exp %60 : vector<1x8x8xf32>
    %cst_30 = arith.constant dense<0.000000e+00> : vector<1x8xf32>
    %62 = vector.multi_reduction <add>, %61, %cst_30 [2] : vector<1x8x8xf32> to vector<1x8xf32>
    %63 = vector.shape_cast %62 : vector<1x8xf32> to vector<1x8x1xf32>
    %64 = tpu.reciprocal %63 {approx = true} : vector<1x8x1xf32> -> vector<1x8x1xf32>
    %65 = vector.extract_strided_slice %12 {offsets = [0, 0, 32], sizes = [1, 8, 32], strides = [1, 1, 1]} : vector<1x8x128xf32> to vector<1x8x32xf32>
    "tpu.trace_start"() <{level = 10 : i32, message = "bqk,bkf->bqf"}> : () -> ()
    %cst_31 = arith.constant dense<0.000000e+00> : vector<1x8x32xf32>
    %66 = tpu.matmul %61, %65, %cst_31 {dimension_numbers = #tpu.dot_dimension_numbers<[2], [1], [1], [2], [0, 0, 0, 1, 1, 2], [0], [0]>} : vector<1x8x8xf32>, vector<1x8x32xf32>, vector<1x8x32xf32> -> vector<1x8x32xf32>
    "tpu.trace_stop"() : () -> ()
    %67 = vector.broadcast %64 : vector<1x8x1xf32> to vector<1x8x32xf32>
    %68 = arith.mulf %66, %67 : vector<1x8x32xf32>
    %69 = vector.extract_strided_slice %16 {offsets = [0, 0, 32], sizes = [1, 1, 32], strides = [1, 1, 1]} : vector<1x1x128xf32> to vector<1x1x32xf32>
    %70 = vector.broadcast %69 : vector<1x1x32xf32> to vector<1x8x32xf32>
    %71 = arith.addf %68, %70 : vector<1x8x32xf32>
    %c0_32 = arith.constant 0 : index
    %c0_33 = arith.constant 0 : index
    %c32 = arith.constant 32 : index
    %72 = vector.load %arg7[%c0_32, %c0_33, %c32] : memref<1x8x128xf32, #tpu.memory_space<vmem>>, vector<1x8x32xf32>
    tpu.vector_store %arg7[%c0_32, %c0_33, %c32], %71 {strides = array<i32>} : memref<1x8x128xf32, #tpu.memory_space<vmem>>, vector<1x8x32xf32>,
    %73 = vector.extract_strided_slice %9 {offsets = [0, 0, 2], sizes = [1, 8, 1], strides = [1, 1, 1]} : vector<1x8x4xf32> to vector<1x8x1xf32>
    %74 = vector.extract_strided_slice %11 {offsets = [0, 2, 0], sizes = [1, 1, 8], strides = [1, 1, 1]} : vector<1x4x8xf32> to vector<1x1x8xf32>
    %75 = vector.broadcast %73 : vector<1x8x1xf32> to vector<1x8x8xf32>
    %76 = vector.broadcast %74 : vector<1x1x8xf32> to vector<1x8x8xf32>
    %77 = arith.addf %75, %76 : vector<1x8x8xf32>
    %cst_34 = arith.constant 0.000000e+00 : f32
    %78 = vector.broadcast %cst_34 : f32 to vector<1x8x8xf32>
    %79 = arith.cmpf oge, %77, %78 : vector<1x8x8xf32>
    %cst_35 = arith.constant 2.000000e-01 : f32
    %80 = vector.broadcast %cst_35 : f32 to vector<1x8x8xf32>
    %81 = arith.mulf %80, %77 : vector<1x8x8xf32>
    %82 = arith.select %79, %77, %81 : vector<1x8x8xi1>, vector<1x8x8xf32>
    %cst_36 = arith.constant -1.000000e+30 : f32
    %83 = vector.broadcast %cst_36 : f32 to vector<1x8x8xf32>
    %84 = arith.select %15, %83, %82 : vector<1x8x8xi1>, vector<1x8x8xf32>
    %cst_37 = arith.constant dense<0xFF800000> : vector<1x8xf32>
    %85 = vector.multi_reduction <maximumf>, %84, %cst_37 [2] : vector<1x8x8xf32> to vector<1x8xf32>
    %86 = vector.shape_cast %85 : vector<1x8xf32> to vector<1x8x1xf32>
    %87 = vector.broadcast %86 : vector<1x8x1xf32> to vector<1x8x8xf32>
    %88 = arith.subf %84, %87 : vector<1x8x8xf32>
    %89 = math.exp %88 : vector<1x8x8xf32>
    %cst_38 = arith.constant dense<0.000000e+00> : vector<1x8xf32>
    %90 = vector.multi_reduction <add>, %89, %cst_38 [2] : vector<1x8x8xf32> to vector<1x8xf32>
    %91 = vector.shape_cast %90 : vector<1x8xf32> to vector<1x8x1xf32>
    %92 = tpu.reciprocal %91 {approx = true} : vector<1x8x1xf32> -> vector<1x8x1xf32>
    %93 = vector.extract_strided_slice %12 {offsets = [0, 0, 64], sizes = [1, 8, 32], strides = [1, 1, 1]} : vector<1x8x128xf32> to vector<1x8x32xf32>
    "tpu.trace_start"() <{level = 10 : i32, message = "bqk,bkf->bqf"}> : () -> ()
    %cst_39 = arith.constant dense<0.000000e+00> : vector<1x8x32xf32>
    %94 = tpu.matmul %89, %93, %cst_39 {dimension_numbers = #tpu.dot_dimension_numbers<[2], [1], [1], [2], [0, 0, 0, 1, 1, 2], [0], [0]>} : vector<1x8x8xf32>, vector<1x8x32xf32>, vector<1x8x32xf32> -> vector<1x8x32xf32>
    "tpu.trace_stop"() : () -> ()
    %95 = vector.broadcast %92 : vector<1x8x1xf32> to vector<1x8x32xf32>
    %96 = arith.mulf %94, %95 : vector<1x8x32xf32>
    %97 = vector.extract_strided_slice %16 {offsets = [0, 0, 64], sizes = [1, 1, 32], strides = [1, 1, 1]} : vector<1x1x128xf32> to vector<1x1x32xf32>
    %98 = vector.broadcast %97 : vector<1x1x32xf32> to vector<1x8x32xf32>
    %99 = arith.addf %96, %98 : vector<1x8x32xf32>
    %c0_40 = arith.constant 0 : index
    %c0_41 = arith.constant 0 : index
    %c64 = arith.constant 64 : index
    %100 = vector.load %arg7[%c0_40, %c0_41, %c64] : memref<1x8x128xf32, #tpu.memory_space<vmem>>, vector<1x8x32xf32>
    tpu.vector_store %arg7[%c0_40, %c0_41, %c64], %99 {strides = array<i32>} : memref<1x8x128xf32, #tpu.memory_space<vmem>>, vector<1x8x32xf32>,
    %101 = vector.extract_strided_slice %9 {offsets = [0, 0, 3], sizes = [1, 8, 1], strides = [1, 1, 1]} : vector<1x8x4xf32> to vector<1x8x1xf32>
    %102 = vector.extract_strided_slice %11 {offsets = [0, 3, 0], sizes = [1, 1, 8], strides = [1, 1, 1]} : vector<1x4x8xf32> to vector<1x1x8xf32>
    %103 = vector.broadcast %101 : vector<1x8x1xf32> to vector<1x8x8xf32>
    %104 = vector.broadcast %102 : vector<1x1x8xf32> to vector<1x8x8xf32>
    %105 = arith.addf %103, %104 : vector<1x8x8xf32>
    %cst_42 = arith.constant 0.000000e+00 : f32
    %106 = vector.broadcast %cst_42 : f32 to vector<1x8x8xf32>
    %107 = arith.cmpf oge, %105, %106 : vector<1x8x8xf32>
    %cst_43 = arith.constant 2.000000e-01 : f32
    %108 = vector.broadcast %cst_43 : f32 to vector<1x8x8xf32>
    %109 = arith.mulf %108, %105 : vector<1x8x8xf32>
    %110 = arith.select %107, %105, %109 : vector<1x8x8xi1>, vector<1x8x8xf32>
    %cst_44 = arith.constant -1.000000e+30 : f32
    %111 = vector.broadcast %cst_44 : f32 to vector<1x8x8xf32>
    %112 = arith.select %15, %111, %110 : vector<1x8x8xi1>, vector<1x8x8xf32>
    %cst_45 = arith.constant dense<0xFF800000> : vector<1x8xf32>
    %113 = vector.multi_reduction <maximumf>, %112, %cst_45 [2] : vector<1x8x8xf32> to vector<1x8xf32>
    %114 = vector.shape_cast %113 : vector<1x8xf32> to vector<1x8x1xf32>
    %115 = vector.broadcast %114 : vector<1x8x1xf32> to vector<1x8x8xf32>
    %116 = arith.subf %112, %115 : vector<1x8x8xf32>
    %117 = math.exp %116 : vector<1x8x8xf32>
    %cst_46 = arith.constant dense<0.000000e+00> : vector<1x8xf32>
    %118 = vector.multi_reduction <add>, %117, %cst_46 [2] : vector<1x8x8xf32> to vector<1x8xf32>
    %119 = vector.shape_cast %118 : vector<1x8xf32> to vector<1x8x1xf32>
    %120 = tpu.reciprocal %119 {approx = true} : vector<1x8x1xf32> -> vector<1x8x1xf32>
    %121 = vector.extract_strided_slice %12 {offsets = [0, 0, 96], sizes = [1, 8, 32], strides = [1, 1, 1]} : vector<1x8x128xf32> to vector<1x8x32xf32>
    "tpu.trace_start"() <{level = 10 : i32, message = "bqk,bkf->bqf"}> : () -> ()
    %cst_47 = arith.constant dense<0.000000e+00> : vector<1x8x32xf32>
    %122 = tpu.matmul %117, %121, %cst_47 {dimension_numbers = #tpu.dot_dimension_numbers<[2], [1], [1], [2], [0, 0, 0, 1, 1, 2], [0], [0]>} : vector<1x8x8xf32>, vector<1x8x32xf32>, vector<1x8x32xf32> -> vector<1x8x32xf32>
    "tpu.trace_stop"() : () -> ()
    %123 = vector.broadcast %120 : vector<1x8x1xf32> to vector<1x8x32xf32>
    %124 = arith.mulf %122, %123 : vector<1x8x32xf32>
    %125 = vector.extract_strided_slice %16 {offsets = [0, 0, 96], sizes = [1, 1, 32], strides = [1, 1, 1]} : vector<1x1x128xf32> to vector<1x1x32xf32>
    %126 = vector.broadcast %125 : vector<1x1x32xf32> to vector<1x8x32xf32>
    %127 = arith.addf %124, %126 : vector<1x8x32xf32>
    %c0_48 = arith.constant 0 : index
    %c0_49 = arith.constant 0 : index
    %c96 = arith.constant 96 : index
    %128 = vector.load %arg7[%c0_48, %c0_49, %c96] : memref<1x8x128xf32, #tpu.memory_space<vmem>>, vector<1x8x32xf32>
    tpu.vector_store %arg7[%c0_48, %c0_49, %c96], %127 {strides = array<i32>} : memref<1x8x128xf32, #tpu.memory_space<vmem>>, vector<1x8x32xf32>,
    return
  }
  func.func @transform_0(%arg0: i32) -> (i32, i32, i32) {
    %c0_i32 = arith.constant 0 : i32
    %c0_i32_0 = arith.constant 0 : i32
    %c0_i32_1 = arith.constant 0 : i32
    return %arg0, %c0_i32, %c0_i32_0 : i32, i32, i32
  }
  func.func @transform_1(%arg0: i32) -> (i32, i32) {
    %c0_i32 = arith.constant 0 : i32
    %c0_i32_0 = arith.constant 0 : i32
    %c0_i32_1 = arith.constant 0 : i32
    return %c0_i32, %c0_i32_0 : i32, i32
  }
  func.func @transform_2(%arg0: i32) -> (i32, i32) {
    %c0_i32 = arith.constant 0 : i32
    %c0_i32_0 = arith.constant 0 : i32
    %c0_i32_1 = arith.constant 0 : i32
    return %c0_i32, %c0_i32_0 : i32, i32
  }
  func.func @transform_3(%arg0: i32) -> (i32, i32) {
    %c0_i32 = arith.constant 0 : i32
    %c0_i32_0 = arith.constant 0 : i32
    %c0_i32_1 = arith.constant 0 : i32
    return %c0_i32, %c0_i32_0 : i32, i32
  }
  func.func @transform_4(%arg0: i32) -> (i32, i32, i32) {
    %c0_i32 = arith.constant 0 : i32
    %c0_i32_0 = arith.constant 0 : i32
    %c0_i32_1 = arith.constant 0 : i32
    return %arg0, %c0_i32, %c0_i32_0 : i32, i32, i32
  }
  func.func @transform_5(%arg0: i32) -> (i32, i32, i32) {
    %c0_i32 = arith.constant 0 : i32
    %c0_i32_0 = arith.constant 0 : i32
    %c0_i32_1 = arith.constant 0 : i32
    %c0_i32_2 = arith.constant 0 : i32
    return %c0_i32, %c0_i32_0, %c0_i32_1 : i32, i32, i32
  }
  func.func @transform_6(%arg0: i32) -> (i32, i32, i32) {
    %c0_i32 = arith.constant 0 : i32
    %c0_i32_0 = arith.constant 0 : i32
    %c0_i32_1 = arith.constant 0 : i32
    return %arg0, %c0_i32, %c0_i32_0 : i32, i32, i32
  }
}

</mosaic_0001>

<bundles_post_ra>
// kernel: tpu_custom_call.1
= control target key start
LH: loop header
LB: loop body
LE: loop exit
PB: predicated region body
PF: predicated region fallthrough
CT: control target
= control target key end

     0   :  { %11 = vsyncpa [#allocation3], 0  ;;  %s1708_s0 = inlined_call_operand.vmem [shape: f32[2,8,16], index: 0, kind: input, shape index: {}]   ;;  %s1709_s1 = inlined_call_operand.vmem [shape: f32[16,128], index: 1, kind: input, shape index: {}]   ;;  %s1710_s2 = inlined_call_operand.vmem [shape: f32[128,4], index: 2, kind: input, shape index: {}]   ;;  %s1711_s3 = inlined_call_operand.vmem [shape: f32[128,4], index: 3, kind: input, shape index: {}]   ;;  %s1712_s4 = inlined_call_operand.vmem [shape: f32[2,8,8], index: 4, kind: input, shape index: {}]   ;;  %s1713_s5 = inlined_call_operand.vmem [shape: f32[1,1,128], index: 5, kind: input, shape index: {}]   ;;  %s1714_s6 = inlined_call_operand.hbm [shape: f32[2,8,128], index: 6, kind: output, shape index: {}]  }
   0x1   :  { %13 = vsyncpa [#allocation3 + $0x1], 0  ;;  %s1410_s21 = smov 0   ;;  %s1412_s22 = smov 0  }
   0x2   :  { %s1414_s23 = smov 0   ;;  %s1416_s24 = smov 0  }
   0x3 LB: > { %s1431_s25 = sadd.s32 4294967295, %s1363_s24   ;;  %s1073_s26 = sadd.s32 4294967294, %s1363_s24   ;;  %s1363_s24 = sphi %s1416_s24, %s1720_s24   ;;  %s1359_s23 = sphi %s1414_s23, %s1719_s23   ;;  %s1355_s22 = sphi %s1412_s22, %s1718_s22   ;;  %s1351_s21 = sphi %s1410_s21, %s1717_s21  }
   0x4   : > { %s1435_s27 = sadd.s32 1, %s1363_s24   ;;  %s162_s28 = sadd.s32 1, %s1359_s23 }
   0x5   : > { %s159_s29 = ssub.s32 %s1363_s24, %s1435_s27  ;;  %p172_p0 = scmp.ne.s32.totalorder %s1359_s23, %s1355_s22 }
   0x6   : > { %p160_p1 = scmp.eq.s32.totalorder %s159_s29, 0  ;;  %p173_p2 = scmp.eq.s32.totalorder %s1431_s25, 1 }
   0x7   : > { %p178_p3 = scmp.ne.s32.totalorder %s1355_s22, %s1351_s21  ;;  %p179_p4 = scmp.eq.s32.totalorder %s1073_s26, 1 }
   0x8   : > { %s1446_s30 = scalar_select %p160_p1, %s1359_s23, %s162_s28  }
   0x9   : > { %p1448_p5 = por %p173_p2, %p172_p0  ;;  %p1452_p6 = por %p179_p4, %p178_p3 }
   0xa   : > { %p1076_p7 = scmp.ge.s32.totalorder %s1363_s24, 1  ;;  %p223_p8 = scmp.lt.s32.totalorder %s1363_s24, 3 }
   0xc   : > { %p224_p9 = pnand %p1076_p7, %p223_p8 }
   0xd   : > { %p256_p10 = scmp.lt.s32.totalorder (!%p224_p9), %s1431_s25, 1  ;;  %s1371_s20 = smov (!%p224_p9), 96  }
   0xe   : > { %227 = sbr.rel (%p224_p9) target bundleno = 1099 (0x44b), region = 44  ;;  %s1372_s26 = smov (!%p224_p9), 64  }
   0xf   : > { %s1373_s28 = smov (!%p224_p9), 32   ;;  %s1087_s11 = sshll.u32 (!%p224_p9), %s1431_s25, 7 }
  0x10   : > { %s1673_s16 = scalar_lea.hbm (!%p224_p9), %s1714_s6, %s1087_s11 }
  0x13   : > { %v266_v0 = vld [vmem:[%s1709_s1 + $0x8] sm:$0xff]  ;;  %v1365_v1 = vmov 0.0   ;;  %v265_v2 = vld [vmem:[%s1709_s1] sm:$0xff]  ;;  %vm1366_vm0 = vmmov 0   ;;  %v357_v3 = vld [vmem:[%s1710_s2 + $0x78] sm:$0xff]  ;;  %s1472_s15 = scalar_select %p256_p10, %s1431_s25, 1  ;;  %v554_v47 = vlaneseq }
  0x14   : > { %1135 = vmatprep.subr.mxu0 %v1365_v1  ;;  %1139 = vmatprep.mubr.msk.f32.mxu0 %vm1366_vm0, %v1365_v1  ;;  %v356_v4 = vld [vmem:[%s1710_s2 + $0x70] sm:$0xff]  ;;  %vm267_vm1 = vcmask 130048   ;;  %v355_v5 = vld [vmem:[%s1710_s2 + $0x68] sm:$0xff]  ;;  %v443_v6 = vld [vmem:[%s1711_s3 + $0x78] sm:$0xff]  ;;  %v1367_v36 = vmov 2   ;;  %v1368_v37 = vmov 0  }
  0x15   : > { %1136 = vmatpush3.msra.mxu0 %v266_v0  ;;  %1142 = vmatprep.subr.mxu1 %v1365_v1  ;;  %s1078_s18 = sshll.u32 %s1472_s15, 3  ;;  %v354_v8 = vld [vmem:[%s1710_s2 + $0x60] sm:$0xff]  ;;  %v442_v9 = vld [vmem:[%s1711_s3 + $0x70] sm:$0xff]  ;;  %v353_v10 = vld [vmem:[%s1710_s2 + $0x58] sm:$0xff]  ;;  %v1369_v45 = vmov 3   ;;  %v1370_v46 = vmov 1  }
  0x16   : > { %1137 = vmatprep.subr.mxu0 %v1365_v1  ;;  %1143 = vmatpush3.msra.mxu1 %v357_v3  ;;  %s259_s29 = scalar_lea.vmem %s1708_s0, %s1078_s18  ;;  %v441_v11 = vld [vmem:[%s1711_s3 + $0x68] sm:$0xff]  ;;  %v352_v12 = vld [vmem:[%s1710_s2 + $0x50] sm:$0xff]  ;;  %v440_v13 = vld [vmem:[%s1711_s3 + $0x60] sm:$0xff]  ;;  %v555_v49 = vshrl.u32 %v554_v47, 7  ;;  %s263_s19 = scalar_lea.vmem %s1712_s4, %s1078_s18  ;;  %vm563_vm5 = vcmask 64512   ;;  %vm655_vm8 = vcmask 261120  }
  0x17   : > { %1138 = vmatpush3.msra.mxu0 %v265_v2  ;;  %1144 = vmatprep.subr.mxu1 %v1365_v1  ;;  %v264_v7 = vld [vmem:[%s259_s29] sm:$0xff]  ;;  %v351_v14 = vld [vmem:[%s1710_s2 + $0x48] sm:$0xff]  ;;  %v439_v15 = vld [vmem:[%s1711_s3 + $0x58] sm:$0xff]  ;;  %s253_s29 = sand.u32 1, %s1355_s22   ;;  %vm766_vm9 = vcmask 523520   ;;  %vm876_vm10 = vcmask 785920  }
  0x18   : > { %1177 = vmatprep.subr.mxu0 %v1365_v1  ;;  %1145 = vmatpush3.msra.mxu1 %v356_v4  ;;  %v350_v16 = vld [vmem:[%s1710_s2 + $0x40] sm:$0xff]  ;;  %v438_v17 = vld [vmem:[%s1711_s3 + $0x50] sm:$0xff]  ;;  %v349_v18 = vld [vmem:[%s1710_s2 + $0x38] sm:$0xff]  ;;  %v556_v52 = vsub.s32 0, %v555_v49  ;;  %v663_v53 = vsub.s32 1, %v555_v49  ;;  %v774_v54 = vsub.s32 2, %v555_v49 }
  0x19   : > { %1146 = vmatprep.subr.mxu1 %v1365_v1  ;;  %1174 = vmatprep.mubr.msk.f32.mxu1 %vm1366_vm0, %v1365_v1  ;;  %v437_v19 = vld [vmem:[%s1711_s3 + $0x48] sm:$0xff]  ;;  %v436_v20 = vld [vmem:[%s1711_s3 + $0x40] sm:$0xff]  ;;  %v435_v21 = vld [vmem:[%s1711_s3 + $0x38] sm:$0xff]  ;;  %v884_v55 = vsub.s32 3, %v555_v49  ;;  %s1077_s9 = sshll.u32 %s253_s29, 3  ;;  %vm986_vm11 = vcmask 1048320  }
  0x1a   : > { %1140 = vmatmul.mubr.msk.f32.vlgmr.msra.gmra.mxu0 %vm267_vm1, %v264_v7  ;;  %1147 = vmatpush3.msra.mxu1 %v355_v5  ;;  %v348_v22 = vld [vmem:[%s1710_s2 + $0x30] sm:$0xff]  ;;  %v347_v24 = vld [vmem:[%s1710_s2 + $0x28] sm:$0xff]  ;;  %v346_v26 = vld [vmem:[%s1710_s2 + $0x20] sm:$0xff]  ;;  %s255_s10 = scalar_lea.vmem [#allocation2], %s1077_s9  ;;  %s989_s17 = scalar_lea.sflag [#allocation3], %s253_s29 }
  0x1b   : > { %1178 = vmatpush3.msra.mxu0 %v443_v6  ;;  %1148 = vmatprep.subr.mxu1 %v1365_v1  ;;  %v434_v23 = vld [vmem:[%s1711_s3 + $0x30] sm:$0xff]  ;;  %v433_v25 = vld [vmem:[%s1711_s3 + $0x28] sm:$0xff]  ;;  %v432_v27 = vld [vmem:[%s1711_s3 + $0x20] sm:$0xff]  ;;  %s1002_s12 = sshll.u32 %s255_s10, 4  ;;  %s1374_s15 = smov [#allocation2]   ;;  %s1003_s12 = int_to_ptr.vmem [resolvable:$true] %s1002_s12 }
  0x1c   : > { %1179 = vmatprep.subr.mxu0 %v1365_v1  ;;  %1149 = vmatpush3.msra.mxu1 %v354_v8  ;;  %v345_v28 = vld [vmem:[%s1710_s2 + $0x18] sm:$0xff]  ;;  %v344_v30 = vld [vmem:[%s1710_s2 + $0x10] sm:$0xff]  ;;  %v343_v32 = vld [vmem:[%s1710_s2 + $0x8] sm:$0xff]  ;;  %s1307_s18 = sshll.u32 %s1374_s15, 4  ;;  %s1308_s18 = int_to_ptr.vmem [resolvable:$false] %s1307_s18 }
  0x1d   : > { %1180 = vmatpush3.msra.mxu0 %v442_v9  ;;  %1150 = vmatprep.subr.mxu1 %v1365_v1  ;;  %v431_v29 = vld [vmem:[%s1711_s3 + $0x18] sm:$0xff]  ;;  %v430_v31 = vld [vmem:[%s1711_s3 + $0x10] sm:$0xff]  ;;  %v429_v33 = vld [vmem:[%s1711_s3 + $0x8] sm:$0xff]  ;;  %s1309_s25 = scalar_lea.vmem %s1308_s18, 256  ;;  %p1310_p0 = scmp.lt.s32.totalorder %s1003_s12, %s1308_s18 }
  0x1e   : > { %1181 = vmatprep.subr.mxu0 %v1365_v1  ;;  %1151 = vmatpush3.msra.mxu1 %v353_v10  ;;  %v342_v34 = vld [vmem:[%s1710_s2] sm:$0xff] }
  0x1f   : > { %1182 = vmatpush3.msra.mxu0 %v441_v11  ;;  %1152 = vmatprep.subr.mxu1 %v1365_v1  ;;  %v428_v35 = vld [vmem:[%s1711_s3] sm:$0xff] }
  0x20   : > { %1183 = vmatprep.subr.mxu0 %v1365_v1  ;;  %1153 = vmatpush3.msra.mxu1 %v352_v12  ;;  %v546_v61 = vld [vmem:[%s263_s19] sm:$0xff]  ;;  %s1303_s19 = scalar_lea.vmem %s1003_s12, 128 }
  0x21   : > { %1184 = vmatpush3.msra.mxu0 %v440_v13  ;;  %1154 = vmatprep.subr.mxu1 %v1365_v1  ;;  %vm547_vm2 = vcmp.ne.f32.partialorder %v546_v61, 1.0  ;;  %p1304_p11 = scmp.ne.s32.totalorder %s1003_s12, %s1303_s19  ;;  %p1311_p1 = scmp.lt.s32.totalorder %s1309_s25, %s1303_s19 }
  0x22   : > { %1185 = vmatprep.subr.mxu0 %v1365_v1  ;;  %1155 = vmatpush3.msra.mxu1 %v351_v14 }
  0x23   : > { %1186 = vmatpush3.msra.mxu0 %v439_v15  ;;  %1156 = vmatprep.subr.mxu1 %v1365_v1  ;;  %p1305_p12 = pnand %p1304_p11, %p1448_p5  ;;  %p1312_p2 = por %p1311_p1, %p1310_p0 }
  0x24   : > { %1187 = vmatprep.subr.mxu0 %v1365_v1  ;;  %1157 = vmatpush3.msra.mxu1 %v350_v16 }
  0x25   : > { %1188 = vmatpush3.msra.mxu0 %v438_v17  ;;  %1158 = vmatprep.subr.mxu1 %v1365_v1  ;;  %p1306_p13 = pneg %p1305_p12 }
  0x26   : > { %1189 = vmatprep.subr.mxu0 %v1365_v1  ;;  %1159 = vmatpush3.msra.mxu1 %v349_v18 }
  0x27   : > { %1190 = vmatpush3.msra.mxu0 %v437_v19  ;;  %1160 = vmatprep.subr.mxu1 %v1365_v1  ;;  %p1313_p3 = pnand %p1312_p2, %p1306_p13 }
  0x28   : > { %1191 = vmatprep.subr.mxu0 %v1365_v1  ;;  %1209 = vmatprep.mubr.msk.f32.mxu0 %vm1366_vm0, %v1365_v1 }
  0x29   : > { %1192 = vmatpush3.msra.mxu0 %v436_v20  ;;  %1161 = vmatpush3.msra.mxu1 %v348_v22  ;;  %v1637_v20 = vld [vmem:[%s1713_s5] ss:$0 sm:$0xff] }
  0x2a   : > { %1193 = vmatprep.subr.mxu0 %v1365_v1  ;;  %1162 = vmatprep.subr.mxu1 %v1365_v1 }
  0x2b   : > { %1194 = vmatpush3.msra.mxu0 %v435_v21  ;;  %1163 = vmatpush3.msra.mxu1 %v347_v24 }
  0x2c   : > { %1195 = vmatprep.subr.mxu0 %v1365_v1  ;;  %1164 = vmatprep.subr.mxu1 %v1365_v1 }
  0x2d   : > { %1196 = vmatpush3.msra.mxu0 %v434_v23  ;;  %1165 = vmatpush3.msra.mxu1 %v346_v26 }
  0x2e   : > { %1197 = vmatprep.subr.mxu0 %v1365_v1  ;;  %1166 = vmatprep.subr.mxu1 %v1365_v1 }
  0x2f   : > { %1198 = vmatpush3.msra.mxu0 %v433_v25  ;;  %1167 = vmatpush3.msra.mxu1 %v345_v28 }
  0x30   : > { %1199 = vmatprep.subr.mxu0 %v1365_v1  ;;  %1168 = vmatprep.subr.mxu1 %v1365_v1 }
  0x31   : > { %1200 = vmatpush3.msra.mxu0 %v432_v27  ;;  %1169 = vmatpush3.msra.mxu1 %v344_v30 }
  0x32   : > { %1201 = vmatprep.subr.mxu0 %v1365_v1  ;;  %1170 = vmatprep.subr.mxu1 %v1365_v1 }
  0x33   : > { %1202 = vmatpush3.msra.mxu0 %v431_v29  ;;  %1171 = vmatpush3.msra.mxu1 %v343_v32 }
  0x34   : > { %1203 = vmatprep.subr.mxu0 %v1365_v1  ;;  %1172 = vmatprep.subr.mxu1 %v1365_v1 }
  0x35   : > { %1204 = vmatpush3.msra.mxu0 %v430_v31  ;;  %1173 = vmatpush3.msra.mxu1 %v342_v34 }
  0x36   : > { %1205 = vmatprep.subr.mxu0 %v1365_v1  ;;  %1212 = vmatprep.subr.mxu1 %v1365_v1 }
  0x37   : > { %1206 = vmatpush3.msra.mxu0 %v429_v33  ;;  %1282 = vset.pattern.permute.xlu1 %v1367_v36 }
  0x38   : > { %1207 = vmatprep.subr.mxu0 %v1365_v1  ;;  %1280 = vset.pattern.permute.xlu0 %v1368_v37 }
  0x39   : > { %1208 = vmatpush3.msra.mxu0 %v428_v35 }
  0x3a   : > { %1217 = vmatprep.subr.mxu0 %v1365_v1 }
  0xda   : > { %v1612_v38 = vpop.f32.mrf.mxu0 }
  0xdb   : > { %1285 = vtanh.f32 %v1612_v38 }
  0xdc   : > { %v1141_v39 = vpop.f32.mrf.mxu0 }
  0xe8   : > { %v1286_v40 = vpop.eup %1285 }
  0xe9   : > { %1175 = vmatmul.mubr.f32.vlgmr.msra.gmra.mxu1 %v1286_v40  ;;  %1210 = vmatmul.mubr.f32.vlgmr.msra.gmra.mxu0 %v1286_v40 }
  0xea   : > { %1213 = vmatpush3.msra.mxu1 %v1612_v38  ;;  %1214 = vmatprep.mubr.msk.f32.mxu1 %vm1366_vm0, %v1365_v1 }
  0xeb   : > { %1222 = vmatprep.subr.mxu1 %v1365_v1  ;;  %1219 = vmatprep.mubr.msk.f32.mxu0 %vm1366_vm0, %v1365_v1 }
 0x1a9   : > { %v424_v41 = vpop.f32.mrf.mxu1  ;;  %v510_v42 = vpop.f32.mrf.mxu0 }
 0x1aa   : > { %769 = vperm.xlu1 %1282, %v424_v41   ;;  %551 = vperm.xlu0 %1280, %v424_v41  }
 0x1ab   : > { %v1176_v43 = vpop.f32.mrf.mxu1  ;;  %v1211_v44 = vpop.f32.mrf.mxu0 }
 0x1ae   : > { %1283 = vset.pattern.permute.xlu1 %v1369_v45  ;;  %1281 = vset.pattern.permute.xlu0 %v1370_v46 }
 0x1af   : > { %879 = vperm.xlu1 %1283, %v424_v41   ;;  %658 = vperm.xlu0 %1281, %v424_v41  }
 0x1b3   : > { %1284 = vset.pattern.permute.xlu0 %v1369_v45 }
 0x1d8   : > { %514 = vxpose.xlu1.b32.start.end [1/1] (short) (narrow) %v510_v42, 8 }
 0x225   : > { %v770_v48 = vpop.permute.xlu1 %769  ;;  %v552_v50 = vpop.permute.xlu0 %551 }
 0x22a   : > { %v880_v51 = vpop.permute.xlu1 %879  ;;  %v659_v62 = vpop.permute.xlu0 %658 }
 0x254   : > { %v530_v56 = vpop.trf.xlu1 }
 0x255   : > { %v557_v57 = vrot.slane %v530_v56, %v556_v52  ;;  %v664_v58 = vrot.slane %v530_v56, %v663_v53  ;;  %v775_v59 = vrot.slane %v530_v56, %v774_v54  ;;  %v885_v60 = vrot.slane %v530_v56, %v884_v55 }
 0x257   : > { %v886_v63 = vadd.f32 %v885_v60, %v880_v51  ;;  %v558_v0 = vadd.f32 %v557_v57, %v552_v50  ;;  %v665_v2 = vadd.f32 %v664_v58, %v659_v62  ;;  %v776_v3 = vadd.f32 %v775_v59, %v770_v48 }
 0x259   : > { %vm887_vm3 = vcmp.ge.f32.partialorder %v886_v63, 0.0  ;;  %v888_v4 = vmul.f32 0.2, %v886_v63  ;;  %vm559_vm4 = vcmp.ge.f32.partialorder %v558_v0, 0.0  ;;  %v560_v5 = vmul.f32 0.2, %v558_v0 }
 0x25a   : > { %vm666_vm6 = vcmp.ge.f32.partialorder %v665_v2, 0.0  ;;  %v667_v6 = vmul.f32 0.2, %v665_v2  ;;  %v778_v9 = vmul.f32 0.2, %v776_v3  ;;  %vm777_vm7 = vcmp.ge.f32.partialorder %v776_v3, 0.0 }
 0x25b   : > { %v889_v7 = vsel %vm887_vm3, %v886_v63, %v888_v4  ;;  %v561_v8 = vsel %vm559_vm4, %v558_v0, %v560_v5 }
 0x25c   : > { %v890_v10 = vsel %vm547_vm2, -1e+30, %v889_v7  ;;  %v562_v11 = vsel %vm547_vm2, -1e+30, %v561_v8  ;;  %v668_v12 = vsel %vm666_vm6, %v665_v2, %v667_v6  ;;  %v779_v16 = vsel %vm777_vm7, %v776_v3, %v778_v9 }
 0x25d   : > { %v891_v13 = vsel %vm563_vm5, %v890_v10, -inf  ;;  %v564_v14 = vsel %vm563_vm5, %v562_v11, -inf  ;;  %v669_v15 = vsel %vm547_vm2, -1e+30, %v668_v12  ;;  %v780_v18 = vsel %vm547_vm2, -1e+30, %v779_v16 }
 0x25e   : > { %892 = vmax.xlane.f32.xlu1 %v891_v13  ;;  %565 = vmax.xlane.f32.xlu0 %v564_v14  ;;  %v670_v17 = vsel %vm563_vm5, %v669_v15, -inf  ;;  %v781_v19 = vsel %vm563_vm5, %v780_v18, -inf }
 0x262   : > { %671 = vmax.xlane.f32.xlu0 %v670_v17 }
 0x266   : > { %782 = vmax.xlane.f32.xlu0 %v781_v19 }
 0x26f   : > { %758 = vrot.lane.b32.xlu1 %v1637_v20, %s1371_s20 }
 0x27c   : > { %681 = vrot.lane.b32.xlu0 %v1612_v38, %s1371_s20 }
 0x280   : > { %791 = vrot.lane.b32.xlu0 %v1612_v38, %s1372_s26 }
 0x284   : > { %901 = vrot.lane.b32.xlu0 %v1612_v38, %s1373_s28 }
 0x2e7   : > { %v566_v21 = vpop.xlane.xlu0 %565  ;;  %v893_v22 = vpop.xlane.xlu1 %892 }
 0x2e8   : > { %v567_v23 = vsub.f32 %v562_v11, %v566_v21  ;;  %v894_v25 = vsub.f32 %v890_v10, %v893_v22 }
 0x2ea   : > { %v568_v24 = vmul.f32 1.442695, %v567_v23  ;;  %v895_v29 = vmul.f32 1.442695, %v894_v25 }
 0x2eb   : > { %v672_v26 = vpop.xlane.xlu0 %671 }
 0x2ec   : > { %v673_v27 = vsub.f32 %v669_v15, %v672_v26  ;;  %1287 = vpow2.f32 %v568_v24 }
 0x2ee   : > { %v674_v28 = vmul.f32 1.442695, %v673_v27 }
 0x2ef   : > { %v783_v30 = vpop.xlane.xlu0 %782 }
 0x2f0   : > { %1289 = vpow2.f32 %v674_v28  ;;  %v784_v31 = vsub.f32 %v780_v18, %v783_v30 }
 0x2f1   : > { %1291 = vpow2.f32 %v895_v29 }
 0x2f2   : > { %v785_v32 = vmul.f32 1.442695, %v784_v31 }
 0x2f3   : > { %v682_v33 = vpop.permute.xlu0 %681 }
 0x2f4   : > { %1293 = vpow2.f32 %v785_v32  ;;  %1218 = vmatpush3.msra.mxu0 %v682_v33 }
 0x2f5   : > { %1227 = vmatprep.subr.mxu0 %v1365_v1 }
 0x2f7   : > { %v792_v34 = vpop.permute.xlu0 %791 }
 0x2f9   : > { %v1288_v35 = vpop.eup %1287 }
 0x2fa   : > { %1215 = vmatmul.mubr.msk.f32.vlgmr.msra.gmra.mxu1 %vm563_vm5, %v1288_v35  ;;  %v570_v43 = vsel %vm563_vm5, %v1288_v35, 0.0 }
 0x2fb   : > { %1223 = vmatpush3.msra.mxu1 %v792_v34  ;;  %1224 = vmatprep.mubr.msk.f32.mxu1 %vm1366_vm0, %v1365_v1  ;;  %v902_v37 = vpop.permute.xlu0 %901 }
 0x2fd   : > { %v1290_v36 = vpop.eup %1289 }
 0x2fe   : > { %1220 = vmatmul.mubr.msk.f32.vlgmr.msra.gmra.mxu0 %vm563_vm5, %v1290_v36  ;;  %v676_v38 = vsel %vm563_vm5, %v1290_v36, 0.0  ;;  %v1292_v39 = vpop.eup %1291 }
 0x2ff   : > { %1228 = vmatpush3.msra.mxu0 %v902_v37  ;;  %677 = vadd.xlane.f32.xlu0 %v676_v38  ;;  %v897_v42 = vsel %vm563_vm5, %v1292_v39, 0.0 }
 0x300   : > { %1229 = vmatprep.mubr.msk.f32.mxu0 %vm1366_vm0, %v1365_v1  ;;  %v759_v1 = vpop.permute.xlu1 %758 }
 0x301   : > { %v1294_v40 = vpop.eup %1293 }
 0x302   : > { %1225 = vmatmul.mubr.msk.f32.vlgmr.msra.gmra.mxu1 %vm563_vm5, %v1294_v40  ;;  %1230 = vmatmul.mubr.msk.f32.vlgmr.msra.gmra.mxu0 %vm563_vm5, %v1292_v39  ;;  %v787_v41 = vsel %vm563_vm5, %v1294_v40, 0.0 }
 0x303   : > { %788 = vadd.xlane.f32.xlu1 %v787_v41 }
 0x307   : > { %898 = vadd.xlane.f32.xlu1 %v897_v42 }
 0x315   : > { %868 = vrot.lane.b32.xlu0 %v1637_v20, %s1372_s26 }
 0x318   : > { %978 = vrot.lane.b32.xlu1 %v1637_v20, %s1373_s28 }
 0x33c   : > { %571 = vadd.xlane.f32.xlu1 %v570_v43 }
 0x388   : > { %v678_v44 = vpop.xlane.xlu0 %677 }
 0x389   : > { %1295 = vrcp.f32 %v678_v44 }
 0x38c   : > { %v789_v45 = vpop.xlane.xlu1 %788  ;;  %v869_v55 = vpop.permute.xlu0 %868 }
 0x38d   : > { %1297 = vrcp.f32 %v789_v45 }
 0x390   : > { %v899_v46 = vpop.xlane.xlu1 %898 }
 0x391   : > { %1299 = vrcp.f32 %v899_v46 }
 0x394   : > { %v979_v52 = vpop.permute.xlu1 %978 }
 0x396   : > { %v1296_v49 = vpop.eup %1295 }
 0x39a   : > { %v1298_v56 = vpop.eup %1297 }
 0x39e   : > { %v1300_v60 = vpop.eup %1299 }
 0x3ba   : > { %v643_v47 = vpop.f32.mrf.mxu1 }
 0x3bc   : > { %v1216_v48 = vpop.f32.mrf.mxu1 }
 0x3be   : > { %v753_v50 = vpop.f32.mrf.mxu0 }
 0x3bf   : > { %v757_v51 = vmul.f32 %v1296_v49, %v753_v50 }
 0x3c0   : > { %v1221_v53 = vpop.f32.mrf.mxu0 }
 0x3c1   : > { %v761_v54 = vadd.f32 %v759_v1, %v757_v51 }
 0x3c2   : > { %v863_v57 = vpop.f32.mrf.mxu1  ;;  %v973_v58 = vpop.f32.mrf.mxu0 }
 0x3c3   : > { %v867_v59 = vmul.f32 %v1298_v56, %v863_v57  ;;  %763 = vrot.lane.b32.xlu0 %v761_v54, %s1373_s28  ;;  %v977_v63 = vmul.f32 %v1300_v60, %v973_v58 }
 0x3c4   : > { %v1226_v61 = vpop.f32.mrf.mxu1  ;;  %v1231_v62 = vpop.f32.mrf.mxu0 }
 0x3c5   : > { %v871_v0 = vadd.f32 %v869_v55, %v867_v59  ;;  %v572_v2 = vpop.xlane.xlu1 %571  ;;  %v981_v3 = vadd.f32 %v979_v52, %v977_v63 }
 0x3c6   : > { %1301 = vrcp.f32 %v572_v2 }
 0x3c7   : > { %873 = vrot.lane.b32.xlu0 %v871_v0, %s1372_s26 }
 0x3cb   : > { %983 = vrot.lane.b32.xlu0 %v981_v3, %s1371_s20 }
 0x3d3   : > { %v1302_v4 = vpop.eup %1301 }
 0x3d4   : > { %v647_v5 = vmul.f32 %v1302_v4, %v643_v47 }
 0x3d6   : > { %v654_v6 = vadd.f32 %v1637_v20, %v647_v5 }
 0x3d8   : > { %656 = vst.msk [vmem:[%s255_s10] sm:$0xff] %vm655_vm8, %v654_v6 }
 0x435   : > { %v764_v7 = vpop.permute.xlu0 %763 }
 0x436   : > { %767 = vst.msk [vmem:[%s255_s10] sm:$0xff] %vm766_vm9, %v764_v7 }
 0x439   : > { %v874_v8 = vpop.permute.xlu0 %873 }
 0x43a   : > { %877 = vst.msk [vmem:[%s255_s10] sm:$0xff] %vm876_vm10, %v874_v8 }
 0x43d   : > { %v984_v9 = vpop.permute.xlu0 %983 }
 0x43e   : > { %987 = vst.msk [vmem:[%s255_s10] sm:$0xff] %vm986_vm11, %v984_v9 }
 0x43f   : > { %1316 = shalt.err (!%p1313_p3)
}
 0x440   : > { %s1317_s20 = scalar_lea.hbm %s1673_s16, 128  ;;  %s1321_s29 = scalar_lea.hbm %s1714_s6, 256 }
 0x441   : > { %p1318_p4 = scmp.ne.s32.totalorder %s1673_s16, %s1317_s20  ;;  %p1322_p9 = scmp.lt.s32.totalorder %s1673_s16, %s1714_s6 }
 0x442   : > { %p1323_p10 = scmp.lt.s32.totalorder %s1321_s29, %s1317_s20 }
 0x443   : > { %p1319_p7 = pnand %p1318_p4, %p1448_p5 }
 0x444   : > { %p1324_p11 = por %p1323_p10, %p1322_p9 }
 0x445   : > { %p1320_p8 = pneg %p1319_p7 }
 0x447   : > { %p1325_p12 = pnand %p1324_p11, %p1320_p8 }
 0x449   : > { %1328 = shalt.err (!%p1325_p12)
}
 0x44a   : > { %1232 = dma.vmem_to_hbm [thread:$0]  (%p1448_p5), %s1003_s12, 128, %s1673_s16, %s989_s17  }
 0x44b PF: > { %p1238_p13 = scmp.ge.s32.totalorder %s1363_s24, 2  ;;  %s1014_s11 = sand.u32 1, %s1351_s21  }
 0x44c   : > { %s1015_s13 = scalar_lea.sflag [#allocation3], %s1014_s11 }
 0x44d   : > { %p1235_p0 = pnand %p1238_p13, %p1452_p6 }
 0x44f   : > { %p1236_p1 = pneg %p1235_p0 }
 0x451   : > { %1346 = dma.done.wait (%p1236_p1), %s1015_s13, 128  }
 0x452   : > { %1348 = vsyncadd (%p1236_p1), %s1015_s13, 4294967168  ;;  %p16_p2 = scmp.ge.s32.totalorder %s1435_s27, 4   ;;  %s1717_s21 = smov %s1355_s22 }
 0x453   : > { %s1718_s22 = smov %s1359_s23  ;;  %s1719_s23 = smov %s1446_s30 }
 0x454   : > { %s1720_s24 = smov %s1435_s27  ;;  %18 = sbr.rel (!%p16_p2) target bundleno = 3 (0x3), region = 82 }
 0x459   :  { %1020 = vsyncpa [#allocation3], 1 }
 0x45a   :  { %1022 = vsyncpa [#allocation3 + $0x1], 1 }

</bundles_post_ra>
